<compile_context>
chip_gen: v5e
topology: v5e:2x2
jax: 0.10.0
libtpu: 0.0.40
codegen_flags: <defaults>
</compile_context>

<pallas_src>
import functools

import numpy as np
import jax
import jax.numpy as jnp
from jax.experimental import pallas as pl
from jax.experimental.pallas import tpu as pltpu


def _build_pe(max_seq_len: int, d_model: int) -> jnp.ndarray:
    """Deterministic positional-encoding table, exactly matching the torch double loop."""
    pos = np.arange(max_seq_len, dtype=np.float64)[:, None]          # (L, 1)
    i_even = np.arange(0, d_model, 2, dtype=np.float64)[None, :]     # (1, D/2)
    pe = np.zeros((max_seq_len, d_model), dtype=np.float64)
    pe[:, 0::2] = np.sin(pos / (10000.0 ** (2.0 * i_even / d_model)))
    pe[:, 1::2] = np.cos(pos / (10000.0 ** (2.0 * (i_even + 1.0) / d_model)))
    return jnp.asarray(pe, dtype=jnp.float32)                        # (max_seq_len, D)


def _vmem_budget_bytes() -> int:
    """Scoped-VMEM limit for this call: half of physical VMEM, capped at 64 MiB.
    -> 32 MiB on v7x (64 MiB physical), 64 MiB on v5e/v6e (128 MiB physical)."""
    try:
        cap = int(pltpu.get_tpu_info().vmem_capacity_bytes)
    except Exception:
        cap = 64 * 1024 * 1024                                       # conservative fallback
    return min(cap // 2, 64 * 1024 * 1024)


def _choose_seq_block(S: int, B: int, bytes_per_row: int, sublane_mult: int,
                      vmem_budget: int) -> int:
    """Rows (sequence positions) per tile.

    Constraints:
      * all live tiles (x, pe, out; each double-buffered) fit in ~75% of vmem_budget,
      * block is a multiple of the dtype's packed sublane count, or equals S,
      * enough total grid steps (>= ~4 overall, >= 2 row blocks at batch 1) so the
        pipeline has work to overlap and both v7x TensorCores get a share.
    """
    # VMEM-derived cap on rows per block.
    cap_rows = max(sublane_mult, (vmem_budget * 3 // 4) // max(bytes_per_row, 1))
    cap_rows = max(sublane_mult, (cap_rows // sublane_mult) * sublane_mult)

    # How many row blocks we'd like for pipelining / megacore sharding.
    min_total_steps = 4
    want_blocks = -(-min_total_steps // max(B, 1))                   # ceil(4 / B)
    if B < 2:
        want_blocks = max(want_blocks, 2)
    max_blocks = -(-S // sublane_mult)                               # can't split below sublane_mult rows
    want_blocks = max(1, min(want_blocks, max_blocks))

    rows_for_steps = max(sublane_mult, S // want_blocks)             # floor keeps >= want_blocks blocks
    rows_for_steps = max(sublane_mult, (rows_for_steps // sublane_mult) * sublane_mult)

    s_blk = min(cap_rows, rows_for_steps)
    if s_blk >= S:
        return S                                                     # single full-S block (always legal)

    # Prefer an aligned divisor of S near s_blk so there is no partial last block.
    for cand in range(s_blk, s_blk // 2, -sublane_mult):
        if cand >= sublane_mult and S % cand == 0:
            return cand
    return s_blk                                                     # cdiv grid handles the partial block


def _pos_enc_kernel(x_ref, pe_ref, o_ref, *, scale):
    # Pure VPU elementwise op on identical (s_blk, D) tiles: f32 math, explicit cast on store.
    x = x_ref[...].astype(jnp.float32)
    o_ref[...] = (x * scale + pe_ref[...]).astype(o_ref.dtype)


@functools.partial(jax.jit, static_argnames=("d_model", "donate_x"))
def positional_encoder(x: jnp.ndarray, pe_full: jnp.ndarray, *, d_model: int,
                       donate_x: bool = False) -> jnp.ndarray:
    """x: (B, S, D); pe_full: (max_seq_len, D) float32. Eval-mode forward (dropout = identity)."""
    B, S, D = x.shape
    assert D == d_model, "last dim of x must equal d_model"
    assert S <= pe_full.shape[0], "seq_len exceeds max_seq_len of the pe table"

    dtype = x.dtype
    itemsize = jnp.dtype(dtype).itemsize
    pe_itemsize = 4                                                  # pe stays float32 in-kernel
    scale = float(np.sqrt(d_model))

    # Dtype-aware sublane packing: 8 rows (f32), 16 (bf16/fp16), 32 (int8/fp8).
    sublane_mult = max(8, 32 // itemsize)

    vmem_budget = _vmem_budget_bytes()
    # Bytes per sequence row across all live tiles:
    # {x, out} double-buffered in x dtype + pe double-buffered in f32.
    bytes_per_row = 2 * D * (2 * itemsize + pe_itemsize)
    s_blk = _choose_seq_block(S, B, bytes_per_row, sublane_mult, vmem_budget)
    num_s = pl.cdiv(S, s_blk)

    pe2 = pe_full[:S].astype(jnp.float32)                            # fused/cached under jit

    kernel = functools.partial(_pos_enc_kernel, scale=scale)

    out = pl.pallas_call(
        kernel,
        out_shape=jax.ShapeDtypeStruct((B, S, D), dtype),
        grid_spec=pltpu.PrefetchScalarGridSpec(
            num_scalar_prefetch=0,
            # Row blocks outer, batch inner: pe's block index does not change across the
            # inner batch loop, so each pe tile is DMA'd once per row block.
            grid=(num_s, B),
            in_specs=[
                # Batch dim squeezed (None) -> kernel views are all (s_blk, D).
                pl.BlockSpec((None, s_blk, D), lambda s, b: (b, s, 0)),   # x tile
                pl.BlockSpec((s_blk, D), lambda s, b: (s, 0)),            # pe tile (batch-invariant)
            ],
            out_specs=pl.BlockSpec((None, s_blk, D), lambda s, b: (b, s, 0)),
        ),
        compiler_params=pltpu.CompilerParams(
            dimension_semantics=("parallel", "parallel"),            # shard across v7x's 2 TCs
            vmem_limit_bytes=vmem_budget,
        ),
        cost_estimate=pl.CostEstimate(
            flops=2 * B * S * D,
            transcendentals=0,
            bytes_accessed=itemsize * 2 * B * S * D + pe_itemsize * S * D,
        ),
        input_output_aliases=({0: 0} if donate_x else {}),
    )(x, pe2)

    return out


if __name__ == "__main__":
    # Small deterministic example consistent with the module's forward:
    # x: (batch=2, seq=8, d_model=32)
    batch, seq, d_model = 2, 8, 32
    max_seq_len = 64

    key = jax.random.PRNGKey(0)
    x = jax.random.normal(key, (batch, seq, d_model), dtype=jnp.float32)

    pe_full = _build_pe(max_seq_len, d_model)

    out = positional_encoder(x, pe_full, d_model=d_model)
    out = jax.block_until_ready(out)

    # Reference check in plain JAX (eval-mode dropout == identity).
    ref = x * np.sqrt(d_model) + pe_full[None, :seq, :]
    np.testing.assert_allclose(np.asarray(out), np.asarray(ref), rtol=1e-6, atol=1e-6)

    print("KERNEL_OK")
</pallas_src>

<mosaic_0001>
module attributes {stable_mosaic.version = 11 : i64} {
  func.func @_pos_enc_kernel(%arg0: i32, %arg1: i32, %arg2: memref<1x8x32xf32, #tpu.memory_space<vmem>>, %arg3: memref<8x32xf32, #tpu.memory_space<vmem>>, %arg4: memref<1x8x32xf32, #tpu.memory_space<vmem>>) attributes {dimension_semantics = [#tpu.dimension_semantics<parallel>, #tpu.dimension_semantics<parallel>], iteration_bounds = array<i64: 1, 2>, scalar_prefetch = 0 : i64, scratch_operands = 0 : i64, tpu.core_type = #tpu.core_type<tc>, window_params = [{transform_indices = @transform_0, window_bounds = array<i64: 1, 8, 32>}, {transform_indices = @transform_1, window_bounds = array<i64: 8, 32>}, {transform_indices = @transform_2, window_bounds = array<i64: 1, 8, 32>}]} {
    %c0 = arith.constant 0 : index
    %c0_0 = arith.constant 0 : index
    %c0_1 = arith.constant 0 : index
    %0 = vector.load %arg2[%c0, %c0_0, %c0_1] : memref<1x8x32xf32, #tpu.memory_space<vmem>>, vector<1x8x32xf32>
    %1 = vector.shape_cast %0 : vector<1x8x32xf32> to vector<8x32xf32>
    %cst = arith.constant 5.65685415 : f32
    %2 = vector.broadcast %cst : f32 to vector<8x32xf32>
    %3 = arith.mulf %1, %2 : vector<8x32xf32>
    %c0_2 = arith.constant 0 : index
    %c0_3 = arith.constant 0 : index
    %4 = vector.load %arg3[%c0_2, %c0_3] : memref<8x32xf32, #tpu.memory_space<vmem>>, vector<8x32xf32>
    %5 = arith.addf %3, %4 : vector<8x32xf32>
    %c0_4 = arith.constant 0 : index
    %c0_5 = arith.constant 0 : index
    %c0_6 = arith.constant 0 : index
    %6 = vector.load %arg4[%c0_4, %c0_5, %c0_6] : memref<1x8x32xf32, #tpu.memory_space<vmem>>, vector<1x8x32xf32>
    %7 = vector.shape_cast %6 : vector<1x8x32xf32> to vector<8x32xf32>
    %8 = vector.shape_cast %5 : vector<8x32xf32> to vector<1x8x32xf32>
    tpu.vector_store %arg4[%c0_4, %c0_5, %c0_6], %8 {strides = array<i32>} : memref<1x8x32xf32, #tpu.memory_space<vmem>>, vector<1x8x32xf32>,
    return
  }
  func.func @transform_0(%arg0: i32, %arg1: i32) -> (i32, i32, i32) {
    %c0_i32 = arith.constant 0 : i32
    %c0_i32_0 = arith.constant 0 : i32
    return %arg1, %arg0, %c0_i32 : i32, i32, i32
  }
  func.func @transform_1(%arg0: i32, %arg1: i32) -> (i32, i32) {
    %c0_i32 = arith.constant 0 : i32
    %c0_i32_0 = arith.constant 0 : i32
    return %arg0, %c0_i32 : i32, i32
  }
  func.func @transform_2(%arg0: i32, %arg1: i32) -> (i32, i32, i32) {
    %c0_i32 = arith.constant 0 : i32
    %c0_i32_0 = arith.constant 0 : i32
    return %arg1, %arg0, %c0_i32 : i32, i32, i32
  }
}

</mosaic_0001>

<bundles_post_ra>
// kernel: positional_encoder.1
= control target key start
LH: loop header
LB: loop body
LE: loop exit
PB: predicated region body
PF: predicated region fallthrough
CT: control target
= control target key end

     0   :  { %7 = vsyncpa [#allocation3], 0  ;;  %s547_s0 = inlined_call_operand.vmem [shape: f32[2,8,32], index: 0, kind: input, shape index: {}]   ;;  %s548_s1 = inlined_call_operand.vmem [shape: f32[8,32], index: 1, kind: input, shape index: {}]   ;;  %s549_s2 = inlined_call_operand.hbm [shape: f32[2,8,32], index: 2, kind: output, shape index: {}]  }
   0x1   :  { %9 = vsyncpa [#allocation3 + $0x1], 0  ;;  %s452_s9 = smov 0   ;;  %s454_s10 = smov 0  }
   0x2   :  { %s456_s11 = smov 0   ;;  %s458_s12 = smov 0  }
   0x3   :  { %s460_s13 = smov 0   ;;  %s462_s14 = smov 0  }
   0x4 LB: > { %s290_s15 = sadd.s32 4294967295, %s435_s14   ;;  %s291_s16 = sadd.s32 4294967294, %s435_s14   ;;  %s435_s14 = sphi %s462_s14, %s15_s14   ;;  %s431_s13 = sphi %s460_s13, %s556_s13   ;;  %s427_s12 = sphi %s458_s12, %s555_s12   ;;  %s423_s11 = sphi %s456_s11, %s554_s11   ;;  %s419_s10 = sphi %s454_s10, %s553_s10   ;;  %s415_s9 = sphi %s452_s9, %s552_s9  }
   0x5   : > { %s24_s17 = sadd.s32 1, %s431_s13  ;;  %s90_s18 = sadd.s32 1, %s423_s11 }
   0x6   : > { %p25_p0 = scmp.ge.s32.totalorder %s24_s17, 2  ;;  %p100_p1 = scmp.ne.s32.totalorder %s423_s11, %s419_s10 }
   0x7   : > { %p101_p2 = scmp.eq.s32.totalorder %s290_s15, 1  ;;  %p106_p3 = scmp.ne.s32.totalorder %s419_s10, %s415_s9 }
   0x8   : > { %s558_s17 = smov (%p25_p0, %s24_s17), 0  ;;  %p107_p5 = scmp.eq.s32.totalorder %s291_s16, 1 }
   0x9   : > { %p490_p4 = por %p101_p2, %p100_p1  ;;  %s85_s20 = ssub.s32 %s431_s13, %s558_s17 }
   0xa   : > { %p295_p6 = scmp.ge.s32.totalorder %s435_s14, 1  ;;  %p88_p7 = scmp.eq.s32.totalorder %s85_s20, 0 }
   0xb   : > { %p497_p8 = por %p107_p5, %p106_p3  ;;  %p142_p9 = scmp.lt.s32.totalorder %s435_s14, 3 }
   0xc   : > { %s503_s22 = scalar_select %p88_p7, %s423_s11, %s90_s18  }
   0xd   : > { %p143_p10 = pnand %p295_p6, %p142_p9 }
   0xe   : > { %s167_s23 = sand.u32 (!%p143_p10), 1, %s419_s10   ;;  %p170_p11 = scmp.lt.s32.totalorder (!%p143_p10), %s427_s12, 1 }
   0xf   : > { %146 = sbr.rel (%p143_p10) target bundleno = 32 (0x20), region = 28  ;;  %s296_s24 = sshll.u32 (!%p143_p10), %s167_s23, 3 }
  0x10   : > { %s299_s25 = sshll.u32 (!%p143_p10), %s427_s12, 3  ;;  %s169_s7 = scalar_lea.vmem (!%p143_p10), [#allocation2], %s296_s24 }
  0x11   : > { %s199_s28 = scalar_lea.hbm (!%p143_p10), %s549_s2, %s299_s25  ;;  %s201_s8 = sshll.u32 (!%p143_p10), %s169_s7, 4  ;;  %s202_s8 = int_to_ptr.vmem [resolvable:$true] %s201_s8 }
  0x12   : > { %s203_s15 = sshll.u32 (!%p143_p10), %s199_s28, 4  ;;  %s377_s24 = scalar_lea.hbm (!%p143_p10), %s549_s2, 16  ;;  %s204_s15 = int_to_ptr.hbm [resolvable:$true] %s203_s15 }
  0x13   : > { %s371_s16 = sshra.s32 (!%p143_p10), %s204_s15, 4  ;;  %s372_s16 = int_to_ptr.hbm [resolvable:$true] %s371_s16 }
  0x14   : > { %s560_s12 = smov (!%p170_p11, %s427_s12), 1  ;;  %v183_v1 = vld [vmem:[%s548_s1] sm:$0xff]  ;;  %vm185_vm0 = vcmask 261120   ;;  %s373_s18 = scalar_lea.hbm %s372_s16, 8 }
  0x15   : > { %s297_s29 = sshll.u32 %s560_s12, 3  ;;  %s188_s12 = scalar_lea.sflag [#allocation3], %s167_s23 }
  0x16   : > { %s176_s4 = scalar_lea.vmem %s547_s0, %s297_s29  ;;  %p374_p12 = scmp.ne.s32.totalorder %s372_s16, %s373_s18 }
  0x17   : > { %v181_v0 = vld [vmem:[%s176_s4] sm:$0xff]  ;;  %p378_p1 = scmp.lt.s32.totalorder %s372_s16, %s549_s2  ;;  %p379_p2 = scmp.lt.s32.totalorder %s377_s24, %s373_s18 }
  0x18   : > { %v182_v2 = vmul.f32 5.656854, %v181_v0  ;;  %p375_p13 = pnand %p374_p12, %p490_p4 }
  0x19   : > { %p380_p3 = por %p379_p2, %p378_p1 }
  0x1a   : > { %v184_v3 = vadd.f32 %v183_v1, %v182_v2  ;;  %p376_p0 = pneg %p375_p13 }
  0x1c   : > { %186 = vst.msk [vmem:[%s169_s7] sm:$0xff] %vm185_vm0, %v184_v3  ;;  %p381_p5 = pnand %p380_p3, %p376_p0 }
  0x1e   : > { %384 = shalt.err (!%p381_p5)
}
  0x1f   : > { %302 = dma.vmem_to_hbm [thread:$0]  (%p490_p4), %s202_s8, 128, %s204_s15, %s188_s12  }
  0x20 PF: > { %p308_p6 = scmp.ge.s32.totalorder %s435_s14, 2  ;;  %s215_s23 = sand.u32 1, %s415_s9  }
  0x21   : > { %s216_s28 = scalar_lea.sflag [#allocation3], %s215_s23 }
  0x22   : > { %p305_p7 = pnand %p308_p6, %p497_p8 }
  0x24   : > { %p306_p9 = pneg %p305_p7 }
  0x26   : > { %410 = dma.done.wait (%p306_p9), %s216_s28, 128  }
  0x27   : > { %412 = vsyncadd (%p306_p9), %s216_s28, 4294967168  ;;  %s15_s14 = sadd.s32 1, %s435_s14   ;;  %s552_s9 = smov %s419_s10 }
  0x28   : > { %p12_p10 = scmp.ge.s32.totalorder %s15_s14, 4   ;;  %s553_s10 = smov %s423_s11 }
  0x29   : > { %s554_s11 = smov %s503_s22  ;;  %s555_s12 = smov %s431_s13 }
  0x2a   : > { %s556_s13 = smov %s558_s17  ;;  %14 = sbr.rel (!%p12_p10) target bundleno = 4 (0x4), region = 66 }
  0x2f   :  { %222 = vsyncpa [#allocation3], 1 }
  0x30   :  { %224 = vsyncpa [#allocation3 + $0x1], 1 }

</bundles_post_ra>
